<compile_context>
chip_gen: v7x
topology: tpu7x:2x2x1
jax: 0.10.0
libtpu: 0.0.40
codegen_flags: <defaults>
</compile_context>

<pallas_src>
import jax
import jax.numpy as jnp
from jax import lax
from jax.experimental import pallas as pl
from jax.experimental.pallas import tpu as pltpu
import numpy as np


def _round_up(x, m):
    return ((x + m - 1) // m) * m


def _make_coxph_kernel(n_valid, ti, tj, sub, unroll):
    n_chunks = tj // 128
    n_sub = ti // sub
    n_main = (n_chunks // unroll) * unroll  # chunks handled by the fori_loop

    def kernel(exp_row_ref, t_row_ref, t_col_ref, hz_col_ref, c_col_ref,
               out_ref, acc_ref):
        # All grid queries at the top level only (never inside pl.when bodies).
        i_idx = pl.program_id(0)
        j_idx = pl.program_id(1)
        j_last = pl.num_programs(1) - 1

        @pl.when(j_idx == 0)
        def _init():
            acc_ref[...] = jnp.zeros_like(acc_ref)

        def sub_body(s, carry):
            # Lane-broadcast time[i] for this sub-block once; stays in vregs
            # for the whole chunk loop (4 vregs at SUB=32).
            t_i = jnp.broadcast_to(t_col_ref[s], (sub, 128))        # (SUB, 128)

            def chunk_group(g, acc):
                base = g * unroll
                for u in range(unroll):                              # static unroll
                    c = base + u
                    t_j = t_row_ref[0, c, :]                         # (128,) time[j]
                    e_j = exp_row_ref[0, c, :]                       # (128,) exp(hazard[j])
                    # compare + select + add: pure VPU work, no stores.
                    acc = acc + jnp.where(t_j >= t_i, e_j, 0.0)
                return acc

            acc = lax.fori_loop(0, n_main // unroll, chunk_group, acc_ref[s])
            for c in range(n_main, n_chunks):                        # static tail (< unroll)
                t_j = t_row_ref[0, c, :]
                e_j = exp_row_ref[0, c, :]
                acc = acc + jnp.where(t_j >= t_i, e_j, 0.0)
            acc_ref[s] = acc                                          # one write per sub-block
            return carry

        lax.fori_loop(0, n_sub, sub_body, 0)

        @pl.when(j_idx == j_last)
        def _finalize():
            # One cross-lane reduce per i-tile (streamed per sub-block).
            def fin_body(s, tot):
                risk = jnp.sum(acc_ref[s], axis=-1, keepdims=True)    # (SUB, 1)
                per = (hz_col_ref[s] - jnp.log(risk)) * c_col_ref[s]
                row = (lax.broadcasted_iota(jnp.int32, (sub, 1), 0)
                       + s * sub + i_idx * ti)
                per = jnp.where(row < n_valid, per, 0.0)              # mask padded rows
                return tot + jnp.sum(per)

            total = lax.fori_loop(0, n_sub, fin_body, jnp.float32(0.0))
            out_ref[...] = jnp.full((1, 128), total, dtype=jnp.float32)

    return kernel


def coxph_loss(hazard, time, censor, *, ti=1024, tj=16384, sub=32, unroll=8):
    """hazard, time, censor: 1-D arrays of identical length N. Returns scalar loss."""
    hazard = jnp.asarray(hazard, jnp.float32).reshape(-1)
    time = jnp.asarray(time, jnp.float32).reshape(-1)
    censor = jnp.asarray(censor, jnp.float32).reshape(-1)
    n = hazard.shape[0]

    # i-tile: multiple of `sub` rows; ensure >= 2 i-blocks when there is enough
    # work so the "parallel" i axis can use both TensorCores on v7x.
    ti = min(ti, _round_up(n, sub))
    if n >= 2 * sub:
        ti = min(ti, _round_up((n + 1) // 2, sub))
    ti = max(sub, _round_up(ti, sub))
    tj = max(128, min(tj, _round_up(n, 128)))

    ni = _round_up(n, ti)
    nj = _round_up(n, tj)
    gi, gj = ni // ti, nj // tj
    n_chunks = tj // 128
    n_sub = ti // sub

    # exp(hazard) computed once here (O(N)); padded j entries carry 0 so they
    # never contribute to any risk sum.
    exp_row = jnp.pad(jnp.exp(hazard), (0, nj - n)).reshape(gj, n_chunks, 128)
    t_row = jnp.pad(time, (0, nj - n)).reshape(gj, n_chunks, 128)
    t_col = jnp.pad(time, (0, ni - n)).reshape(gi * n_sub, sub, 1)
    hz_col = jnp.pad(hazard, (0, ni - n)).reshape(gi * n_sub, sub, 1)
    c_col = jnp.pad(censor, (0, ni - n)).reshape(gi * n_sub, sub, 1)

    kernel = _make_coxph_kernel(n, ti, tj, sub, unroll)

    partials = pl.pallas_call(
        kernel,
        out_shape=jax.ShapeDtypeStruct((1, gi * 128), jnp.float32),
        grid_spec=pltpu.PrefetchScalarGridSpec(
            num_scalar_prefetch=0,
            grid=(gi, gj),                                            # j (reduction) last
            in_specs=[
                pl.BlockSpec((1, n_chunks, 128), lambda i, j: (j, 0, 0)),   # exp(hazard)[j]
                pl.BlockSpec((1, n_chunks, 128), lambda i, j: (j, 0, 0)),   # time[j]
                pl.BlockSpec((n_sub, sub, 1), lambda i, j: (i, 0, 0)),      # time[i]
                pl.BlockSpec((n_sub, sub, 1), lambda i, j: (i, 0, 0)),      # hazard[i]
                pl.BlockSpec((n_sub, sub, 1), lambda i, j: (i, 0, 0)),      # censor[i]
            ],
            out_specs=pl.BlockSpec((1, 128), lambda i, j: (0, i)),          # per-i-tile partial
            scratch_shapes=[pltpu.VMEM((n_sub, sub, 128), jnp.float32)],    # lane-dense risk partials
        ),
        compiler_params=pltpu.CompilerParams(
            dimension_semantics=("parallel", "arbitrary"),
            vmem_limit_bytes=32 * 1024 * 1024,
        ),
    )(exp_row, t_row, t_col, hz_col, c_col)

    tile_sums = partials.reshape(gi, 128)[:, 0]   # all 128 lanes of a block are identical
    return -jnp.sum(tile_sums) / n


def coxph_loss_ref(hazard, time, censor):
    """Pure-numpy reference mirroring the PyTorch forward exactly."""
    hazard = np.asarray(hazard, np.float32)
    time = np.asarray(time, np.float32)
    censor = np.asarray(censor, np.float32)
    r = (time[None, :] >= time[:, None]).astype(np.float32)        # R[i, j] = time[j] >= time[i]
    risk = np.sum(np.exp(hazard)[None, :] * r, axis=1)
    return float(-np.mean((hazard - np.log(risk)) * censor))


if __name__ == "__main__":
    key = jax.random.PRNGKey(0)
    k_h, k_t, k_c, k_h2, k_t2, k_c2 = jax.random.split(key, 6)

    # Small batch consistent with the module's forward (1-D vectors of length N).
    N = 8
    hazard = jax.random.normal(k_h, (N,), dtype=jnp.float32)
    time = jax.random.uniform(k_t, (N,), dtype=jnp.float32, minval=0.1, maxval=5.0)
    censor = jax.random.bernoulli(k_c, 0.7, (N,)).astype(jnp.float32)

    loss = coxph_loss(hazard, time, censor)
    jax.block_until_ready(loss)
    ref = coxph_loss_ref(np.array(hazard), np.array(time), np.array(censor))
    assert np.allclose(np.array(loss), ref, rtol=1e-4, atol=1e-5), (float(loss), ref)

    # Non-multiple-of-tile size with small tiles: exercises the (i, j) grid
    # (gi=5, gj=2), padding/masking, the persistent accumulator across j,
    # the sub-block register tiling and the chunk-loop tail path.
    N2 = 300
    hz2 = jax.random.normal(k_h2, (N2,), dtype=jnp.float32)
    t2 = jax.random.uniform(k_t2, (N2,), dtype=jnp.float32, minval=0.1, maxval=5.0)
    c2 = jax.random.bernoulli(k_c2, 0.7, (N2,)).astype(jnp.float32)
    loss2 = coxph_loss(hz2, t2, c2, ti=64, tj=256)
    jax.block_until_ready(loss2)
    ref2 = coxph_loss_ref(np.array(hz2), np.array(t2), np.array(c2))
    assert np.allclose(np.array(loss2), ref2, rtol=1e-4, atol=1e-5), (float(loss2), ref2)

    # Default (large-tile) config on the mid-size problem as well.
    loss3 = coxph_loss(hz2, t2, c2)
    jax.block_until_ready(loss3)
    assert np.allclose(np.array(loss3), ref2, rtol=1e-4, atol=1e-5), (float(loss3), ref2)

    print("KERNEL_OK")
</pallas_src>

<mosaic_0001>
module attributes {stable_mosaic.version = 11 : i64} {
  func.func @kernel(%arg0: i32, %arg1: i32, %arg2: memref<1x1x128xf32, #tpu.memory_space<vmem>>, %arg3: memref<1x1x128xf32, #tpu.memory_space<vmem>>, %arg4: memref<1x32x1xf32, #tpu.memory_space<vmem>>, %arg5: memref<1x32x1xf32, #tpu.memory_space<vmem>>, %arg6: memref<1x32x1xf32, #tpu.memory_space<vmem>>, %arg7: memref<1x128xf32, #tpu.memory_space<vmem>>, %arg8: memref<1x32x128xf32, #tpu.memory_space<vmem>>) attributes {dimension_semantics = [#tpu.dimension_semantics<parallel>, #tpu.dimension_semantics<arbitrary>], iteration_bounds = array<i64: 1, 1>, scalar_prefetch = 0 : i64, scratch_operands = 1 : i64, tpu.core_type = #tpu.core_type<tc>, window_params = [{transform_indices = @transform_0, window_bounds = array<i64: 1, 1, 128>}, {transform_indices = @transform_1, window_bounds = array<i64: 1, 1, 128>}, {transform_indices = @transform_2, window_bounds = array<i64: 1, 32, 1>}, {transform_indices = @transform_3, window_bounds = array<i64: 1, 32, 1>}, {transform_indices = @transform_4, window_bounds = array<i64: 1, 32, 1>}, {transform_indices = @transform_5, window_bounds = array<i64: 1, 128>}]} {
    %c0_i32 = arith.constant 0 : i32
    %0 = arith.cmpi eq, %arg1, %c0_i32 : i32
    %1 = arith.extui %0 : i1 to i32
    %c0_i32_0 = arith.constant 0 : i32
    %2 = arith.cmpi ne, %1, %c0_i32_0 : i32
    scf.if %2 {
      %cst_19 = arith.constant 0.000000e+00 : f32
      %32 = vector.broadcast %cst_19 : f32 to vector<1x32x128xf32>
      %c0_20 = arith.constant 0 : index
      %c0_21 = arith.constant 0 : index
      %c0_22 = arith.constant 0 : index
      %33 = vector.load %arg8[%c0_20, %c0_21, %c0_22] : memref<1x32x128xf32, #tpu.memory_space<vmem>>, vector<1x32x128xf32>
      tpu.vector_store %arg8[%c0_20, %c0_21, %c0_22], %32 {strides = array<i32>} : memref<1x32x128xf32, #tpu.memory_space<vmem>>, vector<1x32x128xf32>,
    } else {
    }
    %c0_i32_1 = arith.constant 0 : i32
    %3 = arith.index_cast %c0_i32_1 : i32 to index
    %c0 = arith.constant 0 : index
    %c0_2 = arith.constant 0 : index
    %4 = vector.load %arg4[%3, %c0, %c0_2] : memref<1x32x1xf32, #tpu.memory_space<vmem>>, vector<1x32x1xf32>
    %5 = vector.shape_cast %4 : vector<1x32x1xf32> to vector<32x1xf32>
    %6 = vector.shape_cast %5 : vector<32x1xf32> to vector<32x1xf32>
    %7 = vector.broadcast %6 : vector<32x1xf32> to vector<32x128xf32>
    %8 = arith.index_cast %c0_i32_1 : i32 to index
    %c0_3 = arith.constant 0 : index
    %c0_4 = arith.constant 0 : index
    %9 = vector.load %arg8[%8, %c0_3, %c0_4] : memref<1x32x128xf32, #tpu.memory_space<vmem>>, vector<1x32x128xf32>
    %10 = vector.shape_cast %9 : vector<1x32x128xf32> to vector<32x128xf32>
    %c0_i32_5 = arith.constant 0 : i32
    %c0_i32_6 = arith.constant 0 : i32
    %11 = arith.addi %c0_i32_5, %c0_i32_6 : i32
    %c1_i32 = arith.constant 1 : i32
    %12 = scf.for %arg9 = %c0_i32_5 to %11 step %c1_i32 iter_args(%arg10 = %10) -> (vector<32x128xf32>)  : i32 {
      %c8_i32 = arith.constant 8 : i32
      %32 = arith.muli %arg9, %c8_i32 : i32
      %c0_i32_19 = arith.constant 0 : i32
      %33 = arith.addi %32, %c0_i32_19 : i32
      %c0_20 = arith.constant 0 : index
      %34 = arith.index_cast %33 : i32 to index
      %c0_21 = arith.constant 0 : index
      %35 = vector.load %arg3[%c0_20, %34, %c0_21] : memref<1x1x128xf32, #tpu.memory_space<vmem>>, vector<1x1x128xf32>
      %36 = vector.shape_cast %35 : vector<1x1x128xf32> to vector<128xf32>
      %c0_22 = arith.constant 0 : index
      %37 = arith.index_cast %33 : i32 to index
      %c0_23 = arith.constant 0 : index
      %38 = vector.load %arg2[%c0_22, %37, %c0_23] : memref<1x1x128xf32, #tpu.memory_space<vmem>>, vector<1x1x128xf32>
      %39 = vector.shape_cast %38 : vector<1x1x128xf32> to vector<128xf32>
      %40 = vector.shape_cast %36 : vector<128xf32> to vector<1x128xf32>
      %41 = vector.broadcast %40 : vector<1x128xf32> to vector<32x128xf32>
      %42 = arith.cmpf oge, %41, %7 : vector<32x128xf32>
      %cst_24 = arith.constant 0.000000e+00 : f32
      %43 = vector.shape_cast %39 : vector<128xf32> to vector<1x128xf32>
      %44 = vector.broadcast %43 : vector<1x128xf32> to vector<32x128xf32>
      %45 = vector.broadcast %cst_24 : f32 to vector<32x128xf32>
      %46 = arith.select %42, %44, %45 : vector<32x128xi1>, vector<32x128xf32>
      %47 = arith.addf %arg10, %46 : vector<32x128xf32>
      %c1_i32_25 = arith.constant 1 : i32
      %48 = arith.addi %32, %c1_i32_25 : i32
      %c0_26 = arith.constant 0 : index
      %49 = arith.index_cast %48 : i32 to index
      %c0_27 = arith.constant 0 : index
      %50 = vector.load %arg3[%c0_26, %49, %c0_27] : memref<1x1x128xf32, #tpu.memory_space<vmem>>, vector<1x1x128xf32>
      %51 = vector.shape_cast %50 : vector<1x1x128xf32> to vector<128xf32>
      %c0_28 = arith.constant 0 : index
      %52 = arith.index_cast %48 : i32 to index
      %c0_29 = arith.constant 0 : index
      %53 = vector.load %arg2[%c0_28, %52, %c0_29] : memref<1x1x128xf32, #tpu.memory_space<vmem>>, vector<1x1x128xf32>
      %54 = vector.shape_cast %53 : vector<1x1x128xf32> to vector<128xf32>
      %55 = vector.shape_cast %51 : vector<128xf32> to vector<1x128xf32>
      %56 = vector.broadcast %55 : vector<1x128xf32> to vector<32x128xf32>
      %57 = arith.cmpf oge, %56, %7 : vector<32x128xf32>
      %cst_30 = arith.constant 0.000000e+00 : f32
      %58 = vector.shape_cast %54 : vector<128xf32> to vector<1x128xf32>
      %59 = vector.broadcast %58 : vector<1x128xf32> to vector<32x128xf32>
      %60 = vector.broadcast %cst_30 : f32 to vector<32x128xf32>
      %61 = arith.select %57, %59, %60 : vector<32x128xi1>, vector<32x128xf32>
      %62 = arith.addf %47, %61 : vector<32x128xf32>
      %c2_i32 = arith.constant 2 : i32
      %63 = arith.addi %32, %c2_i32 : i32
      %c0_31 = arith.constant 0 : index
      %64 = arith.index_cast %63 : i32 to index
      %c0_32 = arith.constant 0 : index
      %65 = vector.load %arg3[%c0_31, %64, %c0_32] : memref<1x1x128xf32, #tpu.memory_space<vmem>>, vector<1x1x128xf32>
      %66 = vector.shape_cast %65 : vector<1x1x128xf32> to vector<128xf32>
      %c0_33 = arith.constant 0 : index
      %67 = arith.index_cast %63 : i32 to index
      %c0_34 = arith.constant 0 : index
      %68 = vector.load %arg2[%c0_33, %67, %c0_34] : memref<1x1x128xf32, #tpu.memory_space<vmem>>, vector<1x1x128xf32>
      %69 = vector.shape_cast %68 : vector<1x1x128xf32> to vector<128xf32>
      %70 = vector.shape_cast %66 : vector<128xf32> to vector<1x128xf32>
      %71 = vector.broadcast %70 : vector<1x128xf32> to vector<32x128xf32>
      %72 = arith.cmpf oge, %71, %7 : vector<32x128xf32>
      %cst_35 = arith.constant 0.000000e+00 : f32
      %73 = vector.shape_cast %69 : vector<128xf32> to vector<1x128xf32>
      %74 = vector.broadcast %73 : vector<1x128xf32> to vector<32x128xf32>
      %75 = vector.broadcast %cst_35 : f32 to vector<32x128xf32>
      %76 = arith.select %72, %74, %75 : vector<32x128xi1>, vector<32x128xf32>
      %77 = arith.addf %62, %76 : vector<32x128xf32>
      %c3_i32 = arith.constant 3 : i32
      %78 = arith.addi %32, %c3_i32 : i32
      %c0_36 = arith.constant 0 : index
      %79 = arith.index_cast %78 : i32 to index
      %c0_37 = arith.constant 0 : index
      %80 = vector.load %arg3[%c0_36, %79, %c0_37] : memref<1x1x128xf32, #tpu.memory_space<vmem>>, vector<1x1x128xf32>
      %81 = vector.shape_cast %80 : vector<1x1x128xf32> to vector<128xf32>
      %c0_38 = arith.constant 0 : index
      %82 = arith.index_cast %78 : i32 to index
      %c0_39 = arith.constant 0 : index
      %83 = vector.load %arg2[%c0_38, %82, %c0_39] : memref<1x1x128xf32, #tpu.memory_space<vmem>>, vector<1x1x128xf32>
      %84 = vector.shape_cast %83 : vector<1x1x128xf32> to vector<128xf32>
      %85 = vector.shape_cast %81 : vector<128xf32> to vector<1x128xf32>
      %86 = vector.broadcast %85 : vector<1x128xf32> to vector<32x128xf32>
      %87 = arith.cmpf oge, %86, %7 : vector<32x128xf32>
      %cst_40 = arith.constant 0.000000e+00 : f32
      %88 = vector.shape_cast %84 : vector<128xf32> to vector<1x128xf32>
      %89 = vector.broadcast %88 : vector<1x128xf32> to vector<32x128xf32>
      %90 = vector.broadcast %cst_40 : f32 to vector<32x128xf32>
      %91 = arith.select %87, %89, %90 : vector<32x128xi1>, vector<32x128xf32>
      %92 = arith.addf %77, %91 : vector<32x128xf32>
      %c4_i32 = arith.constant 4 : i32
      %93 = arith.addi %32, %c4_i32 : i32
      %c0_41 = arith.constant 0 : index
      %94 = arith.index_cast %93 : i32 to index
      %c0_42 = arith.constant 0 : index
      %95 = vector.load %arg3[%c0_41, %94, %c0_42] : memref<1x1x128xf32, #tpu.memory_space<vmem>>, vector<1x1x128xf32>
      %96 = vector.shape_cast %95 : vector<1x1x128xf32> to vector<128xf32>
      %c0_43 = arith.constant 0 : index
      %97 = arith.index_cast %93 : i32 to index
      %c0_44 = arith.constant 0 : index
      %98 = vector.load %arg2[%c0_43, %97, %c0_44] : memref<1x1x128xf32, #tpu.memory_space<vmem>>, vector<1x1x128xf32>
      %99 = vector.shape_cast %98 : vector<1x1x128xf32> to vector<128xf32>
      %100 = vector.shape_cast %96 : vector<128xf32> to vector<1x128xf32>
      %101 = vector.broadcast %100 : vector<1x128xf32> to vector<32x128xf32>
      %102 = arith.cmpf oge, %101, %7 : vector<32x128xf32>
      %cst_45 = arith.constant 0.000000e+00 : f32
      %103 = vector.shape_cast %99 : vector<128xf32> to vector<1x128xf32>
      %104 = vector.broadcast %103 : vector<1x128xf32> to vector<32x128xf32>
      %105 = vector.broadcast %cst_45 : f32 to vector<32x128xf32>
      %106 = arith.select %102, %104, %105 : vector<32x128xi1>, vector<32x128xf32>
      %107 = arith.addf %92, %106 : vector<32x128xf32>
      %c5_i32 = arith.constant 5 : i32
      %108 = arith.addi %32, %c5_i32 : i32
      %c0_46 = arith.constant 0 : index
      %109 = arith.index_cast %108 : i32 to index
      %c0_47 = arith.constant 0 : index
      %110 = vector.load %arg3[%c0_46, %109, %c0_47] : memref<1x1x128xf32, #tpu.memory_space<vmem>>, vector<1x1x128xf32>
      %111 = vector.shape_cast %110 : vector<1x1x128xf32> to vector<128xf32>
      %c0_48 = arith.constant 0 : index
      %112 = arith.index_cast %108 : i32 to index
      %c0_49 = arith.constant 0 : index
      %113 = vector.load %arg2[%c0_48, %112, %c0_49] : memref<1x1x128xf32, #tpu.memory_space<vmem>>, vector<1x1x128xf32>
      %114 = vector.shape_cast %113 : vector<1x1x128xf32> to vector<128xf32>
      %115 = vector.shape_cast %111 : vector<128xf32> to vector<1x128xf32>
      %116 = vector.broadcast %115 : vector<1x128xf32> to vector<32x128xf32>
      %117 = arith.cmpf oge, %116, %7 : vector<32x128xf32>
      %cst_50 = arith.constant 0.000000e+00 : f32
      %118 = vector.shape_cast %114 : vector<128xf32> to vector<1x128xf32>
      %119 = vector.broadcast %118 : vector<1x128xf32> to vector<32x128xf32>
      %120 = vector.broadcast %cst_50 : f32 to vector<32x128xf32>
      %121 = arith.select %117, %119, %120 : vector<32x128xi1>, vector<32x128xf32>
      %122 = arith.addf %107, %121 : vector<32x128xf32>
      %c6_i32 = arith.constant 6 : i32
      %123 = arith.addi %32, %c6_i32 : i32
      %c0_51 = arith.constant 0 : index
      %124 = arith.index_cast %123 : i32 to index
      %c0_52 = arith.constant 0 : index
      %125 = vector.load %arg3[%c0_51, %124, %c0_52] : memref<1x1x128xf32, #tpu.memory_space<vmem>>, vector<1x1x128xf32>
      %126 = vector.shape_cast %125 : vector<1x1x128xf32> to vector<128xf32>
      %c0_53 = arith.constant 0 : index
      %127 = arith.index_cast %123 : i32 to index
      %c0_54 = arith.constant 0 : index
      %128 = vector.load %arg2[%c0_53, %127, %c0_54] : memref<1x1x128xf32, #tpu.memory_space<vmem>>, vector<1x1x128xf32>
      %129 = vector.shape_cast %128 : vector<1x1x128xf32> to vector<128xf32>
      %130 = vector.shape_cast %126 : vector<128xf32> to vector<1x128xf32>
      %131 = vector.broadcast %130 : vector<1x128xf32> to vector<32x128xf32>
      %132 = arith.cmpf oge, %131, %7 : vector<32x128xf32>
      %cst_55 = arith.constant 0.000000e+00 : f32
      %133 = vector.shape_cast %129 : vector<128xf32> to vector<1x128xf32>
      %134 = vector.broadcast %133 : vector<1x128xf32> to vector<32x128xf32>
      %135 = vector.broadcast %cst_55 : f32 to vector<32x128xf32>
      %136 = arith.select %132, %134, %135 : vector<32x128xi1>, vector<32x128xf32>
      %137 = arith.addf %122, %136 : vector<32x128xf32>
      %c7_i32 = arith.constant 7 : i32
      %138 = arith.addi %32, %c7_i32 : i32
      %c0_56 = arith.constant 0 : index
      %139 = arith.index_cast %138 : i32 to index
      %c0_57 = arith.constant 0 : index
      %140 = vector.load %arg3[%c0_56, %139, %c0_57] : memref<1x1x128xf32, #tpu.memory_space<vmem>>, vector<1x1x128xf32>
      %141 = vector.shape_cast %140 : vector<1x1x128xf32> to vector<128xf32>
      %c0_58 = arith.constant 0 : index
      %142 = arith.index_cast %138 : i32 to index
      %c0_59 = arith.constant 0 : index
      %143 = vector.load %arg2[%c0_58, %142, %c0_59] : memref<1x1x128xf32, #tpu.memory_space<vmem>>, vector<1x1x128xf32>
      %144 = vector.shape_cast %143 : vector<1x1x128xf32> to vector<128xf32>
      %145 = vector.shape_cast %141 : vector<128xf32> to vector<1x128xf32>
      %146 = vector.broadcast %145 : vector<1x128xf32> to vector<32x128xf32>
      %147 = arith.cmpf oge, %146, %7 : vector<32x128xf32>
      %cst_60 = arith.constant 0.000000e+00 : f32
      %148 = vector.shape_cast %144 : vector<128xf32> to vector<1x128xf32>
      %149 = vector.broadcast %148 : vector<1x128xf32> to vector<32x128xf32>
      %150 = vector.broadcast %cst_60 : f32 to vector<32x128xf32>
      %151 = arith.select %147, %149, %150 : vector<32x128xi1>, vector<32x128xf32>
      %152 = arith.addf %137, %151 : vector<32x128xf32>
      scf.yield %152 : vector<32x128xf32>
    }
    %c0_i32_7 = arith.constant 0 : i32
    %c0_8 = arith.constant 0 : index
    %c0_9 = arith.constant 0 : index
    %c0_10 = arith.constant 0 : index
    %13 = vector.load %arg3[%c0_8, %c0_9, %c0_10] : memref<1x1x128xf32, #tpu.memory_space<vmem>>, vector<1x1x128xf32>
    %14 = vector.shape_cast %13 : vector<1x1x128xf32> to vector<128xf32>
    %c0_11 = arith.constant 0 : index
    %c0_12 = arith.constant 0 : index
    %c0_13 = arith.constant 0 : index
    %15 = vector.load %arg2[%c0_11, %c0_12, %c0_13] : memref<1x1x128xf32, #tpu.memory_space<vmem>>, vector<1x1x128xf32>
    %16 = vector.shape_cast %15 : vector<1x1x128xf32> to vector<128xf32>
    %17 = vector.shape_cast %14 : vector<128xf32> to vector<1x128xf32>
    %18 = vector.broadcast %17 : vector<1x128xf32> to vector<32x128xf32>
    %19 = arith.cmpf oge, %18, %7 : vector<32x128xf32>
    %cst = arith.constant 0.000000e+00 : f32
    %20 = vector.shape_cast %16 : vector<128xf32> to vector<1x128xf32>
    %21 = vector.broadcast %20 : vector<1x128xf32> to vector<32x128xf32>
    %22 = vector.broadcast %cst : f32 to vector<32x128xf32>
    %23 = arith.select %19, %21, %22 : vector<32x128xi1>, vector<32x128xf32>
    %24 = arith.addf %12, %23 : vector<32x128xf32>
    %25 = arith.index_cast %c0_i32_1 : i32 to index
    %c0_14 = arith.constant 0 : index
    %c0_15 = arith.constant 0 : index
    %26 = vector.load %arg8[%25, %c0_14, %c0_15] : memref<1x32x128xf32, #tpu.memory_space<vmem>>, vector<1x32x128xf32>
    %27 = vector.shape_cast %26 : vector<1x32x128xf32> to vector<32x128xf32>
    %28 = vector.shape_cast %24 : vector<32x128xf32> to vector<1x32x128xf32>
    tpu.vector_store %arg8[%25, %c0_14, %c0_15], %28 {strides = array<i32>} : memref<1x32x128xf32, #tpu.memory_space<vmem>>, vector<1x32x128xf32>,
    %c1_i32_16 = arith.constant 1 : i32
    %c0_i32_17 = arith.constant 0 : i32
    %29 = arith.cmpi eq, %arg1, %c0_i32_17 : i32
    %30 = arith.extui %29 : i1 to i32
    %c0_i32_18 = arith.constant 0 : i32
    %31 = arith.cmpi ne, %30, %c0_i32_18 : i32
    scf.if %31 {
      %cst_19 = arith.constant 0.000000e+00 : f32
      %c0_i32_20 = arith.constant 0 : i32
      %32 = arith.index_cast %c0_i32_20 : i32 to index
      %c0_21 = arith.constant 0 : index
      %c0_22 = arith.constant 0 : index
      %33 = vector.load %arg8[%32, %c0_21, %c0_22] : memref<1x32x128xf32, #tpu.memory_space<vmem>>, vector<1x32x128xf32>
      %34 = vector.shape_cast %33 : vector<1x32x128xf32> to vector<32x128xf32>
      %cst_23 = arith.constant dense<0.000000e+00> : vector<32xf32>
      %35 = vector.multi_reduction <add>, %34, %cst_23 [1] : vector<32x128xf32> to vector<32xf32>
      %36 = vector.shape_cast %35 : vector<32xf32> to vector<32x1xf32>
      %37 = arith.index_cast %c0_i32_20 : i32 to index
      %c0_24 = arith.constant 0 : index
      %c0_25 = arith.constant 0 : index
      %38 = vector.load %arg5[%37, %c0_24, %c0_25] : memref<1x32x1xf32, #tpu.memory_space<vmem>>, vector<1x32x1xf32>
      %39 = vector.shape_cast %38 : vector<1x32x1xf32> to vector<32x1xf32>
      %40 = math.log %36 : vector<32x1xf32>
      %41 = arith.subf %39, %40 : vector<32x1xf32>
      %42 = arith.index_cast %c0_i32_20 : i32 to index
      %c0_26 = arith.constant 0 : index
      %c0_27 = arith.constant 0 : index
      %43 = vector.load %arg6[%42, %c0_26, %c0_27] : memref<1x32x1xf32, #tpu.memory_space<vmem>>, vector<1x32x1xf32>
      %44 = vector.shape_cast %43 : vector<1x32x1xf32> to vector<32x1xf32>
      %45 = arith.mulf %41, %44 : vector<32x1xf32>
      %46 = tpu.iota {dimensions = array<i32: 0>} : vector<32x1xi32>
      %c32_i32 = arith.constant 32 : i32
      %47 = arith.muli %c0_i32_20, %c32_i32 : i32
      %48 = vector.broadcast %47 : i32 to vector<32x1xi32>
      %49 = arith.addi %46, %48 : vector<32x1xi32>
      %c32_i32_28 = arith.constant 32 : i32
      %50 = arith.muli %arg0, %c32_i32_28 : i32
      %51 = vector.broadcast %50 : i32 to vector<32x1xi32>
      %52 = arith.addi %49, %51 : vector<32x1xi32>
      %c8_i32 = arith.constant 8 : i32
      %53 = vector.broadcast %c8_i32 : i32 to vector<32x1xi32>
      %54 = arith.cmpi slt, %52, %53 : vector<32x1xi32>
      %cst_29 = arith.constant 0.000000e+00 : f32
      %55 = vector.broadcast %cst_29 : f32 to vector<32x1xf32>
      %56 = arith.select %54, %45, %55 : vector<32x1xi1>, vector<32x1xf32>
      %57 = vector.shape_cast %56 : vector<32x1xf32> to vector<1x32x1xf32>
      %cst_30 = arith.constant dense<0.000000e+00> : vector<1xf32>
      %58 = vector.multi_reduction <add>, %57, %cst_30 [1, 2] : vector<1x32x1xf32> to vector<1xf32>
      %59 = vector.shape_cast %58 : vector<1xf32> to vector<1x1x1xf32>
      %60 = vector.extract %59[0, 0, 0] : f32 from vector<1x1x1xf32>
      %61 = arith.addf %cst_19, %60 : f32
      %c1_i32_31 = arith.constant 1 : i32
      %62 = vector.broadcast %61 : f32 to vector<1x128xf32>
      %c0_32 = arith.constant 0 : index
      %c0_33 = arith.constant 0 : index
      %63 = vector.load %arg7[%c0_32, %c0_33] : memref<1x128xf32, #tpu.memory_space<vmem>>, vector<1x128xf32>
      tpu.vector_store %arg7[%c0_32, %c0_33], %62 {strides = array<i32>} : memref<1x128xf32, #tpu.memory_space<vmem>>, vector<1x128xf32>,
    } else {
    }
    return
  }
  func.func @transform_0(%arg0: i32, %arg1: i32) -> (i32, i32, i32) {
    %c0_i32 = arith.constant 0 : i32
    %c0_i32_0 = arith.constant 0 : i32
    %c0_i32_1 = arith.constant 0 : i32
    return %arg1, %c0_i32, %c0_i32_0 : i32, i32, i32
  }
  func.func @transform_1(%arg0: i32, %arg1: i32) -> (i32, i32, i32) {
    %c0_i32 = arith.constant 0 : i32
    %c0_i32_0 = arith.constant 0 : i32
    %c0_i32_1 = arith.constant 0 : i32
    return %arg1, %c0_i32, %c0_i32_0 : i32, i32, i32
  }
  func.func @transform_2(%arg0: i32, %arg1: i32) -> (i32, i32, i32) {
    %c0_i32 = arith.constant 0 : i32
    %c0_i32_0 = arith.constant 0 : i32
    %c0_i32_1 = arith.constant 0 : i32
    return %arg0, %c0_i32, %c0_i32_0 : i32, i32, i32
  }
  func.func @transform_3(%arg0: i32, %arg1: i32) -> (i32, i32, i32) {
    %c0_i32 = arith.constant 0 : i32
    %c0_i32_0 = arith.constant 0 : i32
    %c0_i32_1 = arith.constant 0 : i32
    return %arg0, %c0_i32, %c0_i32_0 : i32, i32, i32
  }
  func.func @transform_4(%arg0: i32, %arg1: i32) -> (i32, i32, i32) {
    %c0_i32 = arith.constant 0 : i32
    %c0_i32_0 = arith.constant 0 : i32
    %c0_i32_1 = arith.constant 0 : i32
    return %arg0, %c0_i32, %c0_i32_0 : i32, i32, i32
  }
  func.func @transform_5(%arg0: i32, %arg1: i32) -> (i32, i32) {
    %c0_i32 = arith.constant 0 : i32
    %c0_i32_0 = arith.constant 0 : i32
    return %c0_i32, %arg0 : i32, i32
  }
}

</mosaic_0001>

<bundles_post_ra>
// kernel: tpu_custom_call.1
= control target key start
LH: loop header
LB: loop body
LE: loop exit
PB: predicated region body
PF: predicated region fallthrough
CT: control target
= control target key end

     0   :  { %s271_s0 = inlined_call_operand.vmem [shape: f32[1,1,128], index: 0, kind: input, shape index: {}]   ;;  %s272_s1 = inlined_call_operand.vmem [shape: f32[1,1,128], index: 1, kind: input, shape index: {}]   ;;  %s273_s2 = inlined_call_operand.vmem [shape: f32[1,32,1], index: 2, kind: input, shape index: {}]   ;;  %s274_s3 = inlined_call_operand.vmem [shape: f32[1,32,1], index: 3, kind: input, shape index: {}]   ;;  %s275_s4 = inlined_call_operand.vmem [shape: f32[1,32,1], index: 4, kind: input, shape index: {}]   ;;  %s276_s5 = inlined_call_operand.hbm [shape: f32[1,128], index: 5, kind: output, shape index: {}]  }
   0x1   :  { %v29_v0 = vld [vmem:[%s273_s2] sm:$0xff] }
   0x2   :  { %10 = vsyncpa [#allocation4], 0  ;;  %v212_v1 = vmov 0   ;;  %v179_v2 = vld [vmem:[%s272_s1] ss:$0 sm:$0xff]  ;;  %vm145_vm1 = vcmask 7168  }
   0x3   :  { %185 = vset.pattern.permute.xlu0 %v212_v1  ;;  %v180_v3 = vld [vmem:[%s271_s0] ss:$0 sm:$0xff]  ;;  %s213_s0 = smov [#allocation3]  }
   0x4   :  { %35 = vperm.xlu0 %185, %v29_v0   ;;  %v102_v8 = vld [vmem:[%s274_s3] sm:$0xff]  ;;  %s171_s1 = sshll.u32 %s213_s0, 4  ;;  %s172_s1 = int_to_ptr.vmem [resolvable:$true] %s171_s1 }
   0x5   :  { %v118_v10 = vld [vmem:[%s275_s4] sm:$0xff]  ;;  %s188_s4 = scalar_lea.vmem %s172_s1, 16  ;;  %s192_s27 = scalar_lea.vmem %s172_s1, 32 }
   0x6   :  { %p189_p0 = scmp.ne.s32.totalorder %s172_s1, %s188_s4  ;;  %p193_p1 = scmp.lt.s32.totalorder %s172_s1, %s172_s1 }
   0x7   :  { %p194_p2 = scmp.lt.s32.totalorder %s192_s27, %s188_s4 }
   0x9   :  { %p195_p3 = por %p194_p2, %p193_p1 }
   0xb   :  { %p196_p4 = pnand %p195_p3, %p189_p0 }
  0x83   :  { %v36_v4 = vpop.permute.xlu0 %35 }
  0x84   :  { %vm65_vm0 = vcmp.ge.f32.partialorder %v179_v2, %v36_v4 }
  0x85   :  { %v75_v5 = vsel %vm65_vm0, %v180_v3, 0.0 }
  0x86   :  { %94 = vadd.xlane.f32.xlu0 %v75_v5 }
 0x113   :  { %v95_v6 = vpop.xlane.xlu0 %94 }
 0x114   :  { %186 = vlog2.f32 %v95_v6 }
 0x11e   :  { %v187_v7 = vpop.eup %186 }
 0x11f   :  { %v107_v9 = vmul.f32 0.6931472, %v187_v7 }
 0x121   :  { %v114_v11 = vsub.f32 %v102_v8, %v107_v9 }
 0x123   :  { %v122_v12 = vmul.f32 %v118_v10, %v114_v11 }
 0x125   :  { %v146_v13 = vsel %vm145_vm1, %v122_v12, 0.0 }
 0x126   :  { %153 = vadd.xlane.f32.xlu1 %v146_v13 }
 0x1b3   :  { %v154_v14 = vpop.xlane.xlu1 %153 }
 0x1b4   :  { %v155_v15 = vrot.slane %v154_v14, 4 }
 0x1b6   :  { %v156_v16 = vadd.f32 %v155_v15, %v154_v14 }
 0x1b8   :  { %v157_v17 = vrot.slane %v156_v16, 2 }
 0x1ba   :  { %v158_v18 = vadd.f32 %v157_v17, %v156_v16 }
 0x1bc   :  { %v159_v19 = vrot.slane %v158_v18, 1 }
 0x1be   :  { %v160_v20 = vadd.f32 %v159_v19, %v158_v18 }
 0x1c0   :  { %181 = vpush %v160_v20 }
 0x1f1   :  { %s182_s3 = spop %181 }
 0x1f2   :  { %v163_v21 = vstv %s182_s3 }
 0x1f3   :  { %164 = vst [vmem:[#allocation3] sm:$0x1] %v163_v21 }
 0x1f4   :  { %199 = shalt.err (!%p196_p4)
}
 0x1f5   :  { %s200_s30 = scalar_lea.hbm %s276_s5, 16 }
 0x1f6   :  { %p201_p5 = scmp.ne.s32.totalorder %s276_s5, %s200_s30  ;;  %p204_p6 = scmp.lt.u32.totalorder %s200_s30, %s276_s5 }
 0x1f8   :  { %p206_p7 = pnand %p204_p6, %p201_p5 }
 0x1fa   :  { %209 = shalt.err (!%p206_p7)
}
 0x1fb   :  { %174 = dma.vmem_to_hbm [thread:$0]  %s172_s1, 16, %s276_s5, [#allocation4]  }
 0x1fc   :  { %210 = dma.done.wait [#allocation4], 16  }
 0x1fd   :  { %211 = vsyncadd [#allocation4], 4294967280 }
 0x1fe   :  { %178 = vsyncpa [#allocation4], 1 }

</bundles_post_ra>
